<compile_context>
chip_gen: v6e
topology: v6e:2x2x1
jax: 0.10.0
libtpu: 0.0.40
codegen_flags: <defaults>
</compile_context>

<pallas_src>
import math

import numpy as np
import jax
import jax.numpy as jnp
from jax.experimental import pallas as pl
from jax.experimental.pallas import tpu as pltpu


# ----------------------------------------------------------------------------
# Trace-time (NumPy) equivalent of GivensRotations.genTrans():
#   trans = mat_{k-1} @ ... @ mat_1 @ mat_0 @ I,   angle = pi/3 for every edge
#   mat[p,p]=c, mat[p,q]=-s, mat[q,p]=s, mat[q,q]=c  with c=cos(a/2), s=sin(a/2)
# No runtime XLA ops — the result is a baked constant.
# ----------------------------------------------------------------------------
def gen_trans_np(n_dims, pqs, angle=math.pi / 3):
    c = np.float32(math.cos(angle / 2.0))
    s = np.float32(math.sin(angle / 2.0))
    trans = np.eye(n_dims, dtype=np.float32)
    for (p, q) in pqs:
        mat = np.eye(n_dims, dtype=np.float32)
        mat[p, p] = c
        mat[p, q] = -s
        mat[q, p] = s
        mat[q, q] = c
        trans = mat @ trans  # same accumulation order as genTrans()
    return trans


# ----------------------------------------------------------------------------
# Pallas kernel: one lane-dense column tile of  h_out = trans @ h
# ----------------------------------------------------------------------------
def _givens_matmul_kernel(t_ref, h_ref, o_ref):
    # (D, D) @ (D, TN) -> (D, TN); f32 accumulate on the MXU, store in the
    # output dtype (no-op cast when everything is f32).
    acc = jnp.dot(t_ref[...], h_ref[...], preferred_element_type=jnp.float32)
    o_ref[...] = acc.astype(o_ref.dtype)


def _round_up(x, m):
    return ((x + m - 1) // m) * m


def _vmem_capacity_bytes():
    """Physical VMEM per TensorCore (128 MiB v5e/v6e, 64 MiB v7x)."""
    try:
        return int(pltpu.get_tpu_info().vmem_capacity_bytes)
    except Exception:
        return 64 << 20  # conservative default (v7x per-TC)


def _choose_tn(N, D, itemsize, tn=None, min_steps=2):
    """Pick the column tile width TN (multiple of 128, or the full extent N).

    Strategy (memory-bound kernel, AI = 2 FLOPs/byte):
      * biggest tile that keeps 2x double-buffered input + 2x output tiles
        inside ~half of physical VMEM (generation-aware via get_tpu_info);
      * but re-balanced so the grid has >= `min_steps` evenly sized steps
        (keeps v7x's two TensorCores busy and avoids a ragged last tile).
    """
    if tn is not None:
        return min(int(tn), N)
    if N <= 512:
        return N  # single full-extent block; overhead-dominated regime anyway

    vmem = _vmem_capacity_bytes()
    budget = vmem // 2                      # leave half for everything else
    per_buffer = budget // 4                # 2 in-tiles + 2 out-tiles
    tn_cap = max(128, (per_buffer // (D * itemsize)) // 128 * 128)
    tn_cap = min(tn_cap, 262144)            # ~8 MiB f32 buffer ceiling

    n_steps = max(pl.cdiv(N, tn_cap), min_steps)
    tn_balanced = _round_up(pl.cdiv(N, n_steps), 128)
    return min(tn_cap, tn_balanced, _round_up(N, 128))


def givens_forward_pallas(trans, h, *, tn=None):
    """h_out = trans @ h with the column axis tiled into lane-dense blocks."""
    D, N = h.shape
    assert trans.shape == (D, D)
    out_dtype = h.dtype
    if trans.dtype != h.dtype:
        trans = trans.astype(h.dtype)   # bf16 path: halves HBM traffic
    itemsize = jnp.dtype(h.dtype).itemsize

    TN = _choose_tn(N, D, itemsize, tn=tn)
    grid = (pl.cdiv(N, TN),)

    # VMEM budget: 2 double-buffered input tiles + 2 output tiles + trans.
    block_bytes = D * TN * itemsize
    vmem_cap = _vmem_capacity_bytes()
    vmem_need = 4 * block_bytes + D * D * itemsize * 2 + (2 << 20)
    vmem_limit = int(min(max(vmem_need, 16 << 20), vmem_cap - (4 << 20)))

    cost = pl.CostEstimate(
        flops=2 * D * D * N,
        transcendentals=0,
        bytes_accessed=2 * D * N * itemsize + D * D * itemsize,
    )

    return pl.pallas_call(
        _givens_matmul_kernel,
        out_shape=jax.ShapeDtypeStruct((D, N), out_dtype),
        grid_spec=pl.GridSpec(
            grid=grid,
            in_specs=[
                # trans: constant block index -> VMEM-resident across all
                # N tiles (single tiny DMA per call).
                pl.BlockSpec((D, D), lambda j: (0, 0)),
                # h: lane-dense (D, TN) tiles marching along N.
                # TODO(synk): if a bundle dump on v7x shows exposed DMA issue
                # latency, add pipeline_mode=pl.Buffered(3) here and on out.
                pl.BlockSpec((D, TN), lambda j: (0, j)),
            ],
            out_specs=pl.BlockSpec((D, TN), lambda j: (0, j)),
        ),
        compiler_params=pltpu.CompilerParams(
            # Independent N tiles: "parallel" lets megacore chips (v7x) split
            # the grid across TensorCores; harmless on single-TC v5e/v6e.
            dimension_semantics=("parallel",),
            vmem_limit_bytes=vmem_limit,
        ),
        cost_estimate=cost,
    )(trans, h)


def givens_forward(trans, h, *, min_pallas_cols=32768):
    """Dispatch wrapper: for small N the whole op is a few tens of KiB and the
    pallas_call launch + DMA setup dominates — let XLA fuse the tiny matmul
    into the surrounding graph.  Use the tiled Pallas kernel once N is large
    enough that HBM streaming dominates fixed overhead."""
    if h.shape[1] < min_pallas_cols:
        return trans @ h
    return givens_forward_pallas(trans, h)


# ----------------------------------------------------------------------------
# Pure-JAX reference of the module forward (sanity check).
# ----------------------------------------------------------------------------
def givens_forward_ref(trans, h):
    return trans @ h


if __name__ == "__main__":
    # Module config: n_qubits=3 -> n_dims = 8; a few (p, q) rotation edges.
    n_qubits = 3
    n_dims = 2 ** n_qubits
    pqs = [(0, 1), (2, 3), (4, 5), (6, 7), (1, 2), (3, 4), (5, 6)]

    # NOTE: the module's learnable per-edge params are initialized in build()
    # but never used by forward() (genTrans hard-codes angle = pi/3); we
    # mirror that by not materializing them at all.
    # TODO(synk): Qiskit circuit construction (build_circuit / genCircuit) is
    # metadata-only and has no numeric Pallas equivalent; omitted.

    # trans built once in NumPy at trace time — zero runtime XLA ops.
    trans = jnp.asarray(gen_trans_np(n_dims, pqs, angle=math.pi / 3))

    # Input h: (n_dims, N). Small demo shape; tn=128 forces a 2-step grid so
    # the tiled / pipelined / parallel path is actually exercised.
    N = 256
    h = jax.random.normal(jax.random.PRNGKey(0), (n_dims, N), dtype=jnp.float32)

    ref = givens_forward_ref(trans, h)

    # Explicit small tile -> 2 grid steps (exercises the pipelined path).
    out = givens_forward_pallas(trans, h, tn=128)
    out = jax.block_until_ready(out)
    assert out.shape == (n_dims, N)
    assert jnp.allclose(out, ref, atol=1e-5, rtol=1e-5)

    # Auto tile selection path (single full-extent block at this small N).
    out2 = jax.block_until_ready(givens_forward_pallas(trans, h))
    assert jnp.allclose(out2, ref, atol=1e-5, rtol=1e-5)

    print("KERNEL_OK")
</pallas_src>

<mosaic_0001>
module attributes {stable_mosaic.version = 11 : i64} {
  func.func @_givens_matmul_kernel(%arg0: i32, %arg1: memref<8x8xf32, #tpu.memory_space<vmem>>, %arg2: memref<8x128xf32, #tpu.memory_space<vmem>>, %arg3: memref<8x128xf32, #tpu.memory_space<vmem>>) attributes {dimension_semantics = [#tpu.dimension_semantics<parallel>], iteration_bounds = array<i64: 2>, scalar_prefetch = 0 : i64, scratch_operands = 0 : i64, tpu.core_type = #tpu.core_type<tc>, window_params = [{pipeline_mode = #tpu.pipeline_mode<synchronous>, transform_indices = @transform_0, window_bounds = array<i64: 8, 8>}, {transform_indices = @transform_1, window_bounds = array<i64: 8, 128>}, {transform_indices = @transform_2, window_bounds = array<i64: 8, 128>}]} {
    %c0 = arith.constant 0 : index
    %c0_0 = arith.constant 0 : index
    %0 = vector.load %arg1[%c0, %c0_0] : memref<8x8xf32, #tpu.memory_space<vmem>>, vector<8x8xf32>
    %c0_1 = arith.constant 0 : index
    %c0_2 = arith.constant 0 : index
    %1 = vector.load %arg2[%c0_1, %c0_2] : memref<8x128xf32, #tpu.memory_space<vmem>>, vector<8x128xf32>
    %cst = arith.constant dense<0.000000e+00> : vector<8x128xf32>
    %2 = tpu.matmul %0, %1, %cst {dimension_numbers = #tpu.dot_dimension_numbers<[1], [0], [0], [1], [0, 0, 1, 1], [], []>} : vector<8x8xf32>, vector<8x128xf32>, vector<8x128xf32> -> vector<8x128xf32>
    %c0_3 = arith.constant 0 : index
    %c0_4 = arith.constant 0 : index
    %3 = vector.load %arg3[%c0_3, %c0_4] : memref<8x128xf32, #tpu.memory_space<vmem>>, vector<8x128xf32>
    tpu.vector_store %arg3[%c0_3, %c0_4], %2 {strides = array<i32>} : memref<8x128xf32, #tpu.memory_space<vmem>>, vector<8x128xf32>,
    return
  }
  func.func @transform_0(%arg0: i32) -> (i32, i32) {
    %c0_i32 = arith.constant 0 : i32
    %c0_i32_0 = arith.constant 0 : i32
    %c0_i32_1 = arith.constant 0 : i32
    return %c0_i32, %c0_i32_0 : i32, i32
  }
  func.func @transform_1(%arg0: i32) -> (i32, i32) {
    %c0_i32 = arith.constant 0 : i32
    %c0_i32_0 = arith.constant 0 : i32
    return %c0_i32, %arg0 : i32, i32
  }
  func.func @transform_2(%arg0: i32) -> (i32, i32) {
    %c0_i32 = arith.constant 0 : i32
    %c0_i32_0 = arith.constant 0 : i32
    return %c0_i32, %arg0 : i32, i32
  }
}

</mosaic_0001>

<bundles_post_ra>
// kernel: tpu_custom_call.1
= control target key start
LH: loop header
LB: loop body
LE: loop exit
PB: predicated region body
PF: predicated region fallthrough
CT: control target
= control target key end

     0   :  { %7 = vsyncpa [#allocation3], 0  ;;  %s748_s0 = inlined_call_operand.hbm [shape: f32[8,8], index: 0, kind: input, shape index: {}]   ;;  %s749_s1 = inlined_call_operand.hbm [shape: f32[8,256], index: 1, kind: input, shape index: {}]   ;;  %s750_s2 = inlined_call_operand.hbm [shape: f32[8,256], index: 2, kind: output, shape index: {}]  }
   0x1   :  { %8 = vsyncpa [#allocation6], 0 }
   0x2   :  { %10 = vsyncpa [#allocation6 + $0x1], 0 }
   0x3   :  { %11 = vsyncpa [#allocation4], 0 }
   0x4   :  { %13 = vsyncpa [#allocation4 + $0x1], 0  ;;  %s570_s9 = smov 0   ;;  %s572_s10 = smov 0  }
   0x5   :  { %s574_s11 = smov 0   ;;  %s576_s12 = smov 0  }
   0x6 LB: > { %s591_s13 = sadd.s32 4294967295, %s548_s12   ;;  %s345_s14 = sadd.s32 4294967294, %s548_s12   ;;  %s548_s12 = sphi %s576_s12, %s773_s12   ;;  %s544_s11 = sphi %s574_s11, %s772_s11   ;;  %s540_s10 = sphi %s572_s10, %s771_s10   ;;  %s536_s9 = sphi %s570_s9, %s770_s9  }
   0x7   : > { %p60_p0 = scmp.ne.s32.totalorder %s540_s10, %s536_s9  ;;  %p751_p1 = scmp.eq.s32.totalorder %s591_s13, 0 }
   0x8   : > { %p90_p3 = scmp.eq.s32.totalorder %s345_s14, 1  ;;  %p346_p5 = scmp.ge.s32.totalorder %s548_s12, 1 }
   0x9   : > { %p600_p4 = por %p751_p1, %p60_p0  ;;  %p97_p7 = scmp.lt.s32.totalorder %s548_s12, 3 }
   0xa   : > { %p605_p6 = por %p90_p3, %p60_p0  ;;  %s550_s18 = smov [#allocation2]  }
   0xb   : > { %s755_s15 = scalar_select %p600_p4, 1, 0 }
   0xc   : > { %s756_s16 = scalar_select %p605_p6, 1, 0 }
   0xd   : > { %p610_p8 = pnand %p346_p5, %p97_p7  ;;  %s110_s19 = sshll.u32 %s550_s18, 4  ;;  %s111_s19 = int_to_ptr.vmem [resolvable:$true] %s110_s19 }
   0xe   : > { %s618_s20 = sadd.s32 1, %s548_s12   ;;  %s47_s24 = sadd.s32 1, %s544_s11 }
   0xf   : > { %s757_s17 = scalar_select %p610_p8, 1, 0 }
  0x10   : > { %p375_p10 = pneg %p610_p8  ;;  %s44_s22 = ssub.s32 %s548_s12, %s618_s20 }
  0x11   : > { %p628_p12 = scmp.eq.s32.totalorder %s44_s22, 0  ;;  %p54_p13 = scmp.ne.s32.totalorder %s544_s11, %s540_s10 }
  0x12   : > { %p622_p11 = pnand %p375_p10, %p751_p1  ;;  %s437_s25 = scalar_lea.vmem %s111_s19, 128 }
  0x13   : > { %p438_p3 = scmp.ne.s32.totalorder %s111_s19, %s437_s25  ;;  %p445_p9 = scmp.lt.s32.totalorder %s111_s19, %s111_s19 }
  0x14   : > { %p428_p0 = pneg %p622_p11  ;;  %p446_p2 = scmp.lt.s32.totalorder %s437_s25, %s437_s25 }
  0x16   : > { %p440_p5 = pnand %p438_p3, %p428_p0  ;;  %p447_p10 = por %p446_p2, %p445_p9 }
  0x18   : > { %p441_p7 = pneg %p440_p5 }
  0x1a   : > { %p448_p1 = pnand %p447_p10, %p441_p7 }
  0x1c   : > { %451 = shalt.err (!%p448_p1)
}
  0x1d   : > { %378 = dma.hbm_to_vmem [thread:$0]  (!%p622_p11), %s748_s0, 128, %s111_s19, [#allocation3]  }
  0x1e   : > { %s645_s28 = scalar_select %p628_p12, %s544_s11, %s47_s24  }
  0x1f   : > { %p55_p1 = scmp.eq.s32.totalorder %s548_s12, 0  ;;  %p760_p2 = scmp.eq.s32.totalorder %s591_s13, 1 }
  0x20   : > { %p388_p0 = scmp.lt.s32.totalorder %s548_s12, 2  ;;  %s121_s30 = sand.u32 1, %s544_s11  }
  0x21   : > { %p653_p9 = por %p760_p2, %p54_p13  ;;  %p56_p3 = por %p55_p1, %p54_p13 }
  0x22   : > { %s349_s3 = sshll.u32 %s121_s30, 3  ;;  %s350_s4 = sshll.u32 %s548_s12, 7 }
  0x23   : > { %s761_s29 = scalar_select %p653_p9, 1, 0 }
  0x24   : > { %s666_s7 = scalar_lea.hbm %s749_s1, %s350_s4  ;;  %s125_s8 = scalar_lea.vmem [#allocation5], %s349_s3 }
  0x25   : > { %s132_s14 = sshll.u32 %s125_s8, 4  ;;  %p668_p11 = pnand %p388_p0, %p56_p3  ;;  %s133_s14 = int_to_ptr.vmem [resolvable:$true] %s132_s14 }
  0x26   : > { %s122_s19 = scalar_lea.sflag [#allocation6], %s121_s30  ;;  %s452_s21 = scalar_lea.hbm %s666_s7, 128 }
  0x27   : > { %p453_p12 = scmp.ne.s32.totalorder %s666_s7, %s452_s21  ;;  %p454_p13 = pneg %p668_p11 }
  0x28   : > { %s457_s24 = scalar_lea.hbm %s749_s1, 256  ;;  %p458_p10 = scmp.lt.s32.totalorder %s666_s7, %s749_s1 }
  0x29   : > { %p455_p5 = pnand %p454_p13, %p453_p12  ;;  %p459_p1 = scmp.lt.s32.totalorder %s457_s24, %s452_s21 }
  0x2b   : > { %p456_p7 = pneg %p455_p5  ;;  %p460_p2 = por %p459_p1, %p458_p10 }
  0x2d   : > { %p461_p0 = pnand %p460_p2, %p456_p7 }
  0x2f   : > { %464 = shalt.err (!%p461_p0)
}
  0x30   : > { %s465_s27 = scalar_lea.vmem %s133_s14, 128  ;;  %s551_s30 = smov [#allocation5]  }
  0x31   : > { %p466_p3 = scmp.ne.s32.totalorder %s133_s14, %s465_s27  ;;  %s470_s3 = sshll.u32 %s551_s30, 4  ;;  %s471_s3 = int_to_ptr.vmem [resolvable:$false] %s470_s3 }
  0x32   : > { %s472_s4 = scalar_lea.vmem %s471_s3, 256  ;;  %p473_p12 = scmp.lt.s32.totalorder %s133_s14, %s471_s3 }
  0x33   : > { %p468_p6 = pnand %p466_p3, %p454_p13  ;;  %p474_p5 = scmp.lt.s32.totalorder %s472_s4, %s465_s27 }
  0x35   : > { %p469_p9 = pneg %p468_p6  ;;  %p475_p4 = por %p474_p5, %p473_p12 }
  0x37   : > { %p476_p8 = pnand %p475_p4, %p469_p9 }
  0x39   : > { %479 = shalt.err (!%p476_p8)
}
  0x3a   : > { %382 = dma.hbm_to_vmem [thread:$0]  (!%p668_p11), %s666_s7, 128, %s133_s14, %s122_s19  }
  0x3b   : > { %p763_p7 = scmp.ne.s32.totalorder %s757_s17, 0 }
  0x3c   : > { %p764_p10 = scmp.eq.s32.totalorder (!%p763_p7), %s591_s13, 0 }
  0x3d   : > { %141 = sbr.rel (%p763_p7) target bundleno = 281 (0x119), region = 28 }
  0x42   : > { %523 = dma.done.wait (%p764_p10), [#allocation3], 128   ;;  %p765_p6 = pmov %p764_p10 }
  0x43   : > { %s693_s5 = sand.u32 1, %s540_s10   ;;  %p766_p4 = scmp.ne.s32.totalorder %s755_s15, 0 }
  0x44   : > { %525 = vsyncadd (%p765_p6), [#allocation3], 4294967168  ;;  %s353_s6 = sshll.u32 %s693_s5, 3  ;;  %s148_s8 = scalar_lea.sflag [#allocation6], %s693_s5 }
  0x45   : > { %s151_s18 = scalar_lea.vmem [#allocation5], %s353_s6 }
  0x46   : > { %527 = dma.done.wait (%p766_p4), %s148_s8, 128  }
  0x47   : > { %529 = vsyncadd (%p766_p4), %s148_s8, 4294967168  ;;  %v552_v0 = vmov 0.0   ;;  %vm553_vm0 = vmmov 0   ;;  %vm174_vm1 = vcmask 64512   ;;  %v173_v1 = vld [vmem:[%s151_s18] sm:$0xff]  ;;  %v172_v2 = vld [vmem:[#allocation2] sm:$0xff] }
  0x48   : > { %362 = vmatprep.subr.mxu0 %v552_v0  ;;  %364 = vmatprep.mubr.msk.f32.mxu0 %vm553_vm0, %v552_v0  ;;  %s171_s17 = scalar_lea.vmem [#allocation7], %s353_s6  ;;  %s357_s14 = sshll.u32 %s591_s13, 7 }
  0x49   : > { %363 = vmatpush3.msra.mxu0 %v173_v1  ;;  %s263_s7 = sshll.u32 %s171_s17, 4  ;;  %s707_s21 = scalar_lea.hbm %s750_s2, %s357_s14  ;;  %s702_s7 = int_to_ptr.vmem [resolvable:$true] %s263_s7 }
  0x4a   : > { %365 = vmatmul.mubr.msk.f32.vlgmr.msra.gmra.mxu0 %vm174_vm1, %v172_v2  ;;  %s250_s22 = scalar_lea.sflag [#allocation4], %s693_s5  ;;  %s480_s23 = scalar_lea.vmem %s702_s7, 128 }
  0x4b   : > { %p481_p8 = scmp.ne.s32.totalorder %s702_s7, %s480_s23  ;;  %p767_p9 = scmp.ne.s32.totalorder %s761_s29, 0 }
  0x4c   : > { %s554_s13 = smov [#allocation7]  }
  0x4d   : > { %p482_p11 = pnand %p481_p8, %p767_p9  ;;  %s484_s24 = sshll.u32 %s554_s13, 4  ;;  %s485_s24 = int_to_ptr.vmem [resolvable:$false] %s484_s24 }
  0x4e   : > { %s486_s25 = scalar_lea.vmem %s485_s24, 256  ;;  %p487_p1 = scmp.lt.s32.totalorder %s702_s7, %s485_s24 }
  0x4f   : > { %p483_p13 = pneg %p482_p11  ;;  %p488_p2 = scmp.lt.s32.totalorder %s486_s25, %s480_s23 }
  0x51   : > { %p489_p0 = por %p488_p2, %p487_p1 }
  0x53   : > { %p490_p3 = pnand %p489_p0, %p483_p13 }
 0x10a   : > { %v244_v3 = vpop.f32.mrf.mxu0 }
 0x10b   : > { %248 = vst [vmem:[%s171_s17] sm:$0xff] %v244_v3 }
 0x10c   : > { %v366_v4 = vpop.f32.mrf.mxu0 }
 0x10d   : > { %493 = shalt.err (!%p490_p3)
}
 0x10e   : > { %s494_s26 = scalar_lea.hbm %s707_s21, 128  ;;  %s498_s3 = scalar_lea.hbm %s750_s2, 256 }
 0x10f   : > { %p495_p12 = scmp.ne.s32.totalorder %s707_s21, %s494_s26  ;;  %p499_p10 = scmp.lt.s32.totalorder %s707_s21, %s750_s2 }
 0x110   : > { %p500_p6 = scmp.lt.s32.totalorder %s498_s3, %s494_s26 }
 0x111   : > { %p496_p5 = pnand %p495_p12, %p767_p9 }
 0x112   : > { %p501_p4 = por %p500_p6, %p499_p10 }
 0x113   : > { %p497_p7 = pneg %p496_p5 }
 0x115   : > { %p502_p8 = pnand %p501_p4, %p497_p7 }
 0x117   : > { %505 = shalt.err (!%p502_p8)
}
 0x118   : > { %373 = dma.vmem_to_hbm [thread:$0]  (%p767_p9), %s702_s7, 128, %s707_s21, %s250_s22  }
 0x119 PF: > { %s275_s6 = sand.u32 1, %s536_s9   ;;  %p768_p11 = scmp.ne.s32.totalorder %s756_s16, 0 }
 0x11a   : > { %p769_p13 = scmp.ge.s32.totalorder %s548_s12, 2  ;;  %s276_s8 = scalar_lea.sflag [#allocation4], %s275_s6 }
 0x11c   : > { %p384_p1 = pnand %p769_p13, %p768_p11 }
 0x11e   : > { %p385_p2 = pneg %p384_p1 }
 0x120   : > { %531 = dma.done.wait (%p385_p2), %s276_s8, 128  }
 0x121   : > { %533 = vsyncadd (%p385_p2), %s276_s8, 4294967168  ;;  %p16_p0 = scmp.ge.s32.totalorder %s618_s20, 4   ;;  %s770_s9 = smov %s540_s10 }
 0x122   : > { %s771_s10 = smov %s544_s11  ;;  %s772_s11 = smov %s645_s28 }
 0x123   : > { %s773_s12 = smov %s618_s20  ;;  %18 = sbr.rel (!%p16_p0) target bundleno = 6 (0x6), region = 78 }
 0x128   :  { %281 = vsyncpa [#allocation3], 1 }
 0x129   :  { %283 = vsyncpa [#allocation3 + $0x1], 1 }
 0x12a   :  { %284 = vsyncpa [#allocation6], 1 }
 0x12b   :  { %286 = vsyncpa [#allocation6 + $0x1], 1 }
 0x12c   :  { %287 = vsyncpa [#allocation4], 1 }
 0x12d   :  { %289 = vsyncpa [#allocation4 + $0x1], 1 }

</bundles_post_ra>
